<compile_context>
chip_gen: v7x
topology: tpu7x:2x2x1
jax: 0.10.0
libtpu: 0.0.40
codegen_flags: <defaults>
</compile_context>

<pallas_src>
import math
import functools

import jax
import jax.numpy as jnp
from jax.experimental import pallas as pl
from jax.experimental.pallas import tpu as pltpu


def mhsa_kernel(x_ref, wq_ref, bq_ref, wk_ref, bk_ref, wv_ref, bv_ref,
                wo_ref, bo_ref, o_ref, *, num_heads):
    # x_ref: (S, E) block for the current batch element (batch dim squeezed).
    S, E = x_ref.shape
    x = x_ref[...].astype(jnp.bfloat16)                       # (S, E) bf16

    # Broadcast x along a new leading head axis so every contraction below is
    # a canonical leading-batch dot_general (no in-kernel transposes needed).
    xh = jnp.broadcast_to(x, (num_heads, S, E))               # (H, S, E)

    # QKV projections: bf16 operands, f32 MXU accumulation, f32 bias add.
    # (Wq/bq already carry the 1/sqrt(head_dim) attention scale.)
    q = jnp.einsum('hse,hed->hsd', xh, wq_ref[...],
                   preferred_element_type=jnp.float32) + bq_ref[...]
    k = jnp.einsum('hse,hed->hsd', xh, wk_ref[...],
                   preferred_element_type=jnp.float32) + bk_ref[...]
    v = jnp.einsum('hse,hed->hsd', xh, wv_ref[...],
                   preferred_element_type=jnp.float32) + bv_ref[...]

    q = q.astype(jnp.bfloat16)
    k = k.astype(jnp.bfloat16)
    v = v.astype(jnp.bfloat16)

    # Scores for all heads in one batched MXU contraction: (H, S, S) in f32.
    s = jnp.einsum('hqd,hkd->hqk', q, k,
                   preferred_element_type=jnp.float32)

    # Numerically stable softmax along the key axis; reciprocal on the EUP.
    s = s - jnp.max(s, axis=-1, keepdims=True)
    ex = jnp.exp(s)
    probs = ex * pl.reciprocal(jnp.sum(ex, axis=-1, keepdims=True), approx=True)

    # Context for all heads: (H, S, D).
    ctx = jnp.einsum('hqk,hkd->hqd', probs.astype(jnp.bfloat16), v,
                     preferred_element_type=jnp.float32)

    # Output projection: per-head partials (H, S, E) on the MXU, then a cheap
    # leading-axis reduction (vreg adds) replaces the head concatenation.
    part = jnp.einsum('hsd,hde->hse', ctx.astype(jnp.bfloat16), wo_ref[...],
                      preferred_element_type=jnp.float32)
    out = jnp.sum(part, axis=0) + bo_ref[...]                 # (S, E)
    o_ref[...] = out.astype(o_ref.dtype)


def mhsa_forward(x, wq, bq, wk, bk, wv, bv, wo, bo, *, num_heads):
    B, S, E = x.shape
    HD = wq.shape[1]
    H = num_heads
    D = HD // H
    scale = 1.0 / math.sqrt(D)

    # One-time per-head rearrangement + bf16 cast outside the kernel (plain
    # XLA), so the kernel never slices or transposes along the head axis.
    # The attention scale is folded into Wq / bq (applied in f32, then cast).
    wq_h = (wq.reshape(E, H, D).transpose(1, 0, 2) * scale).astype(jnp.bfloat16)
    wk_h = wk.reshape(E, H, D).transpose(1, 0, 2).astype(jnp.bfloat16)   # (H,E,D)
    wv_h = wv.reshape(E, H, D).transpose(1, 0, 2).astype(jnp.bfloat16)
    bq_h = (bq.reshape(H, 1, D) * scale).astype(jnp.float32)             # (H,1,D)
    bk_h = bk.reshape(H, 1, D).astype(jnp.float32)
    bv_h = bv.reshape(H, 1, D).astype(jnp.float32)
    wo_h = wo.reshape(H, D, E).astype(jnp.bfloat16)                      # (H,D,E)
    bo_f = bo.astype(jnp.float32)                                        # (1,E)

    kernel = functools.partial(mhsa_kernel, num_heads=H)

    w_spec = pl.BlockSpec((H, E, D), lambda b: (0, 0, 0))
    b_spec = pl.BlockSpec((H, 1, D), lambda b: (0, 0, 0))

    return pl.pallas_call(
        kernel,
        out_shape=jax.ShapeDtypeStruct((B, S, E), x.dtype),
        grid=(B,),
        in_specs=[
            pl.BlockSpec((None, S, E), lambda b: (b, 0, 0)),   # x (batch squeezed)
            w_spec, b_spec,                                    # Wq, bq (pre-scaled)
            w_spec, b_spec,                                    # Wk, bk
            w_spec, b_spec,                                    # Wv, bv
            pl.BlockSpec((H, D, E), lambda b: (0, 0, 0)),      # Wo
            pl.BlockSpec((1, E), lambda b: (0, 0)),            # bo
        ],
        out_specs=pl.BlockSpec((None, S, E), lambda b: (b, 0, 0)),
        compiler_params=pltpu.CompilerParams(
            dimension_semantics=("parallel",)),
    )(x, wq_h, bq_h, wk_h, bk_h, wv_h, bv_h, wo_h, bo_f)


def _reference(x, wq, bq, wk, bk, wv, bv, wo, bo, *, num_heads):
    B, S, E = x.shape
    HD = wq.shape[1]
    D = HD // num_heads
    q = (x @ wq + bq).reshape(B, S, num_heads, D).transpose(0, 2, 1, 3)
    k = (x @ wk + bk).reshape(B, S, num_heads, D).transpose(0, 2, 1, 3)
    v = (x @ wv + bv).reshape(B, S, num_heads, D).transpose(0, 2, 1, 3)
    scores = jnp.einsum("bhqd,bhkd->bhqk", q, k) / math.sqrt(D)
    probs = jax.nn.softmax(scores, axis=-1)
    ctx = jnp.einsum("bhqk,bhkd->bhqd", probs, v)
    ctx = ctx.transpose(0, 2, 1, 3).reshape(B, S, HD)
    return ctx @ wo + bo


if __name__ == "__main__":
    # config: n_embd=32, n_head=4 -> head_dim=8, all_head_dim == n_embd
    B, S, E, H = 2, 8, 32, 4
    HD = E

    key = jax.random.PRNGKey(0)
    ks = jax.random.split(key, 9)
    scale = 0.02
    x  = jax.random.normal(ks[0], (B, S, E), dtype=jnp.float32)
    wq = scale * jax.random.normal(ks[1], (E, HD), dtype=jnp.float32)
    bq = scale * jax.random.normal(ks[2], (1, HD), dtype=jnp.float32)
    wk = scale * jax.random.normal(ks[3], (E, HD), dtype=jnp.float32)
    bk = scale * jax.random.normal(ks[4], (1, HD), dtype=jnp.float32)
    wv = scale * jax.random.normal(ks[5], (E, HD), dtype=jnp.float32)
    bv = scale * jax.random.normal(ks[6], (1, HD), dtype=jnp.float32)
    wo = scale * jax.random.normal(ks[7], (HD, E), dtype=jnp.float32)
    bo = scale * jax.random.normal(ks[8], (1, E), dtype=jnp.float32)

    out = mhsa_forward(x, wq, bq, wk, bk, wv, bv, wo, bo, num_heads=H)
    out = jax.block_until_ready(out)

    ref = _reference(x, wq, bq, wk, bk, wv, bv, wo, bo, num_heads=H)
    assert out.shape == (B, S, E)
    # bf16 matmul operands + approx reciprocal -> loosened tolerance vs f32 ref.
    assert jnp.allclose(out, ref, rtol=2e-2, atol=2e-2), "mismatch vs reference"

    print("KERNEL_OK")
</pallas_src>

<mosaic_0001>
module attributes {stable_mosaic.version = 11 : i64} {
  func.func @mhsa_kernel(%arg0: i32, %arg1: memref<1x8x32xf32, #tpu.memory_space<vmem>>, %arg2: memref<4x32x8xbf16, #tpu.memory_space<vmem>>, %arg3: memref<4x1x8xf32, #tpu.memory_space<vmem>>, %arg4: memref<4x32x8xbf16, #tpu.memory_space<vmem>>, %arg5: memref<4x1x8xf32, #tpu.memory_space<vmem>>, %arg6: memref<4x32x8xbf16, #tpu.memory_space<vmem>>, %arg7: memref<4x1x8xf32, #tpu.memory_space<vmem>>, %arg8: memref<4x8x32xbf16, #tpu.memory_space<vmem>>, %arg9: memref<1x32xf32, #tpu.memory_space<vmem>>, %arg10: memref<1x8x32xf32, #tpu.memory_space<vmem>>) attributes {dimension_semantics = [#tpu.dimension_semantics<parallel>], iteration_bounds = array<i64: 2>, scalar_prefetch = 0 : i64, scratch_operands = 0 : i64, tpu.core_type = #tpu.core_type<tc>, window_params = [{transform_indices = @transform_0, window_bounds = array<i64: 1, 8, 32>}, {pipeline_mode = #tpu.pipeline_mode<synchronous>, transform_indices = @transform_1, window_bounds = array<i64: 4, 32, 8>}, {pipeline_mode = #tpu.pipeline_mode<synchronous>, transform_indices = @transform_2, window_bounds = array<i64: 4, 1, 8>}, {pipeline_mode = #tpu.pipeline_mode<synchronous>, transform_indices = @transform_3, window_bounds = array<i64: 4, 32, 8>}, {pipeline_mode = #tpu.pipeline_mode<synchronous>, transform_indices = @transform_4, window_bounds = array<i64: 4, 1, 8>}, {pipeline_mode = #tpu.pipeline_mode<synchronous>, transform_indices = @transform_5, window_bounds = array<i64: 4, 32, 8>}, {pipeline_mode = #tpu.pipeline_mode<synchronous>, transform_indices = @transform_6, window_bounds = array<i64: 4, 1, 8>}, {pipeline_mode = #tpu.pipeline_mode<synchronous>, transform_indices = @transform_7, window_bounds = array<i64: 4, 8, 32>}, {pipeline_mode = #tpu.pipeline_mode<synchronous>, transform_indices = @transform_8, window_bounds = array<i64: 1, 32>}, {transform_indices = @transform_9, window_bounds = array<i64: 1, 8, 32>}]} {
    %c0 = arith.constant 0 : index
    %c0_0 = arith.constant 0 : index
    %c0_1 = arith.constant 0 : index
    %0 = vector.load %arg1[%c0, %c0_0, %c0_1] : memref<1x8x32xf32, #tpu.memory_space<vmem>>, vector<1x8x32xf32>
    %1 = vector.shape_cast %0 : vector<1x8x32xf32> to vector<8x32xf32>
    %2 = arith.truncf %1 : vector<8x32xf32> to vector<8x32xbf16>
    %3 = vector.shape_cast %2 : vector<8x32xbf16> to vector<1x8x32xbf16>
    %4 = vector.broadcast %3 : vector<1x8x32xbf16> to vector<4x8x32xbf16>
    %c0_2 = arith.constant 0 : index
    %c0_3 = arith.constant 0 : index
    %c0_4 = arith.constant 0 : index
    %5 = vector.load %arg2[%c0_2, %c0_3, %c0_4] : memref<4x32x8xbf16, #tpu.memory_space<vmem>>, vector<4x32x8xbf16>
    "tpu.trace_start"() <{level = 10 : i32, message = "hse,hed->hsd"}> : () -> ()
    %cst = arith.constant dense<0.000000e+00> : vector<4x8x8xf32>
    %6 = tpu.matmul %4, %5, %cst {dimension_numbers = #tpu.dot_dimension_numbers<[2], [1], [1], [2], [0, 0, 0, 1, 1, 2], [0], [0]>} : vector<4x8x32xbf16>, vector<4x32x8xbf16>, vector<4x8x8xf32> -> vector<4x8x8xf32>
    "tpu.trace_stop"() : () -> ()
    %c0_5 = arith.constant 0 : index
    %c0_6 = arith.constant 0 : index
    %c0_7 = arith.constant 0 : index
    %7 = vector.load %arg3[%c0_5, %c0_6, %c0_7] : memref<4x1x8xf32, #tpu.memory_space<vmem>>, vector<4x1x8xf32>
    %8 = vector.broadcast %7 : vector<4x1x8xf32> to vector<4x8x8xf32>
    %9 = arith.addf %6, %8 : vector<4x8x8xf32>
    %c0_8 = arith.constant 0 : index
    %c0_9 = arith.constant 0 : index
    %c0_10 = arith.constant 0 : index
    %10 = vector.load %arg4[%c0_8, %c0_9, %c0_10] : memref<4x32x8xbf16, #tpu.memory_space<vmem>>, vector<4x32x8xbf16>
    "tpu.trace_start"() <{level = 10 : i32, message = "hse,hed->hsd"}> : () -> ()
    %cst_11 = arith.constant dense<0.000000e+00> : vector<4x8x8xf32>
    %11 = tpu.matmul %4, %10, %cst_11 {dimension_numbers = #tpu.dot_dimension_numbers<[2], [1], [1], [2], [0, 0, 0, 1, 1, 2], [0], [0]>} : vector<4x8x32xbf16>, vector<4x32x8xbf16>, vector<4x8x8xf32> -> vector<4x8x8xf32>
    "tpu.trace_stop"() : () -> ()
    %c0_12 = arith.constant 0 : index
    %c0_13 = arith.constant 0 : index
    %c0_14 = arith.constant 0 : index
    %12 = vector.load %arg5[%c0_12, %c0_13, %c0_14] : memref<4x1x8xf32, #tpu.memory_space<vmem>>, vector<4x1x8xf32>
    %13 = vector.broadcast %12 : vector<4x1x8xf32> to vector<4x8x8xf32>
    %14 = arith.addf %11, %13 : vector<4x8x8xf32>
    %c0_15 = arith.constant 0 : index
    %c0_16 = arith.constant 0 : index
    %c0_17 = arith.constant 0 : index
    %15 = vector.load %arg6[%c0_15, %c0_16, %c0_17] : memref<4x32x8xbf16, #tpu.memory_space<vmem>>, vector<4x32x8xbf16>
    "tpu.trace_start"() <{level = 10 : i32, message = "hse,hed->hsd"}> : () -> ()
    %cst_18 = arith.constant dense<0.000000e+00> : vector<4x8x8xf32>
    %16 = tpu.matmul %4, %15, %cst_18 {dimension_numbers = #tpu.dot_dimension_numbers<[2], [1], [1], [2], [0, 0, 0, 1, 1, 2], [0], [0]>} : vector<4x8x32xbf16>, vector<4x32x8xbf16>, vector<4x8x8xf32> -> vector<4x8x8xf32>
    "tpu.trace_stop"() : () -> ()
    %c0_19 = arith.constant 0 : index
    %c0_20 = arith.constant 0 : index
    %c0_21 = arith.constant 0 : index
    %17 = vector.load %arg7[%c0_19, %c0_20, %c0_21] : memref<4x1x8xf32, #tpu.memory_space<vmem>>, vector<4x1x8xf32>
    %18 = vector.broadcast %17 : vector<4x1x8xf32> to vector<4x8x8xf32>
    %19 = arith.addf %16, %18 : vector<4x8x8xf32>
    %20 = arith.truncf %9 : vector<4x8x8xf32> to vector<4x8x8xbf16>
    %21 = arith.truncf %14 : vector<4x8x8xf32> to vector<4x8x8xbf16>
    %22 = arith.truncf %19 : vector<4x8x8xf32> to vector<4x8x8xbf16>
    "tpu.trace_start"() <{level = 10 : i32, message = "hqd,hkd->hqk"}> : () -> ()
    %cst_22 = arith.constant dense<0.000000e+00> : vector<4x8x8xf32>
    %23 = tpu.matmul %20, %21, %cst_22 {dimension_numbers = #tpu.dot_dimension_numbers<[2], [2], [1], [1], [0, 0, 0, 1, 1, 1], [0], [0]>} : vector<4x8x8xbf16>, vector<4x8x8xbf16>, vector<4x8x8xf32> -> vector<4x8x8xf32>
    "tpu.trace_stop"() : () -> ()
    %cst_23 = arith.constant dense<0xFF800000> : vector<4x8xf32>
    %24 = vector.multi_reduction <maximumf>, %23, %cst_23 [2] : vector<4x8x8xf32> to vector<4x8xf32>
    %25 = vector.shape_cast %24 : vector<4x8xf32> to vector<4x8x1xf32>
    %26 = vector.broadcast %25 : vector<4x8x1xf32> to vector<4x8x8xf32>
    %27 = arith.subf %23, %26 : vector<4x8x8xf32>
    %28 = math.exp %27 : vector<4x8x8xf32>
    %cst_24 = arith.constant dense<0.000000e+00> : vector<4x8xf32>
    %29 = vector.multi_reduction <add>, %28, %cst_24 [2] : vector<4x8x8xf32> to vector<4x8xf32>
    %30 = vector.shape_cast %29 : vector<4x8xf32> to vector<4x8x1xf32>
    %31 = tpu.reciprocal %30 {approx = true} : vector<4x8x1xf32> -> vector<4x8x1xf32>
    %32 = vector.broadcast %31 : vector<4x8x1xf32> to vector<4x8x8xf32>
    %33 = arith.mulf %28, %32 : vector<4x8x8xf32>
    %34 = arith.truncf %33 : vector<4x8x8xf32> to vector<4x8x8xbf16>
    "tpu.trace_start"() <{level = 10 : i32, message = "hqk,hkd->hqd"}> : () -> ()
    %cst_25 = arith.constant dense<0.000000e+00> : vector<4x8x8xf32>
    %35 = tpu.matmul %34, %22, %cst_25 {dimension_numbers = #tpu.dot_dimension_numbers<[2], [1], [1], [2], [0, 0, 0, 1, 1, 2], [0], [0]>} : vector<4x8x8xbf16>, vector<4x8x8xbf16>, vector<4x8x8xf32> -> vector<4x8x8xf32>
    "tpu.trace_stop"() : () -> ()
    %36 = arith.truncf %35 : vector<4x8x8xf32> to vector<4x8x8xbf16>
    %c0_26 = arith.constant 0 : index
    %c0_27 = arith.constant 0 : index
    %c0_28 = arith.constant 0 : index
    %37 = vector.load %arg8[%c0_26, %c0_27, %c0_28] : memref<4x8x32xbf16, #tpu.memory_space<vmem>>, vector<4x8x32xbf16>
    "tpu.trace_start"() <{level = 10 : i32, message = "hsd,hde->hse"}> : () -> ()
    %cst_29 = arith.constant dense<0.000000e+00> : vector<4x8x32xf32>
    %38 = tpu.matmul %36, %37, %cst_29 {dimension_numbers = #tpu.dot_dimension_numbers<[2], [1], [1], [2], [0, 0, 0, 1, 1, 2], [0], [0]>} : vector<4x8x8xbf16>, vector<4x8x32xbf16>, vector<4x8x32xf32> -> vector<4x8x32xf32>
    "tpu.trace_stop"() : () -> ()
    %cst_30 = arith.constant dense<0.000000e+00> : vector<8x32xf32>
    %39 = vector.multi_reduction <add>, %38, %cst_30 [0] : vector<4x8x32xf32> to vector<8x32xf32>
    %c0_31 = arith.constant 0 : index
    %c0_32 = arith.constant 0 : index
    %40 = vector.load %arg9[%c0_31, %c0_32] : memref<1x32xf32, #tpu.memory_space<vmem>>, vector<1x32xf32>
    %41 = vector.broadcast %40 : vector<1x32xf32> to vector<8x32xf32>
    %42 = arith.addf %39, %41 : vector<8x32xf32>
    %c0_33 = arith.constant 0 : index
    %c0_34 = arith.constant 0 : index
    %c0_35 = arith.constant 0 : index
    %43 = vector.load %arg10[%c0_33, %c0_34, %c0_35] : memref<1x8x32xf32, #tpu.memory_space<vmem>>, vector<1x8x32xf32>
    %44 = vector.shape_cast %43 : vector<1x8x32xf32> to vector<8x32xf32>
    %45 = vector.shape_cast %42 : vector<8x32xf32> to vector<1x8x32xf32>
    tpu.vector_store %arg10[%c0_33, %c0_34, %c0_35], %45 {strides = array<i32>} : memref<1x8x32xf32, #tpu.memory_space<vmem>>, vector<1x8x32xf32>,
    return
  }
  func.func @transform_0(%arg0: i32) -> (i32, i32, i32) {
    %c0_i32 = arith.constant 0 : i32
    %c0_i32_0 = arith.constant 0 : i32
    %c0_i32_1 = arith.constant 0 : i32
    return %arg0, %c0_i32, %c0_i32_0 : i32, i32, i32
  }
  func.func @transform_1(%arg0: i32) -> (i32, i32, i32) {
    %c0_i32 = arith.constant 0 : i32
    %c0_i32_0 = arith.constant 0 : i32
    %c0_i32_1 = arith.constant 0 : i32
    %c0_i32_2 = arith.constant 0 : i32
    return %c0_i32, %c0_i32_0, %c0_i32_1 : i32, i32, i32
  }
  func.func @transform_2(%arg0: i32) -> (i32, i32, i32) {
    %c0_i32 = arith.constant 0 : i32
    %c0_i32_0 = arith.constant 0 : i32
    %c0_i32_1 = arith.constant 0 : i32
    %c0_i32_2 = arith.constant 0 : i32
    return %c0_i32, %c0_i32_0, %c0_i32_1 : i32, i32, i32
  }
  func.func @transform_3(%arg0: i32) -> (i32, i32, i32) {
    %c0_i32 = arith.constant 0 : i32
    %c0_i32_0 = arith.constant 0 : i32
    %c0_i32_1 = arith.constant 0 : i32
    %c0_i32_2 = arith.constant 0 : i32
    return %c0_i32, %c0_i32_0, %c0_i32_1 : i32, i32, i32
  }
  func.func @transform_4(%arg0: i32) -> (i32, i32, i32) {
    %c0_i32 = arith.constant 0 : i32
    %c0_i32_0 = arith.constant 0 : i32
    %c0_i32_1 = arith.constant 0 : i32
    %c0_i32_2 = arith.constant 0 : i32
    return %c0_i32, %c0_i32_0, %c0_i32_1 : i32, i32, i32
  }
  func.func @transform_5(%arg0: i32) -> (i32, i32, i32) {
    %c0_i32 = arith.constant 0 : i32
    %c0_i32_0 = arith.constant 0 : i32
    %c0_i32_1 = arith.constant 0 : i32
    %c0_i32_2 = arith.constant 0 : i32
    return %c0_i32, %c0_i32_0, %c0_i32_1 : i32, i32, i32
  }
  func.func @transform_6(%arg0: i32) -> (i32, i32, i32) {
    %c0_i32 = arith.constant 0 : i32
    %c0_i32_0 = arith.constant 0 : i32
    %c0_i32_1 = arith.constant 0 : i32
    %c0_i32_2 = arith.constant 0 : i32
    return %c0_i32, %c0_i32_0, %c0_i32_1 : i32, i32, i32
  }
  func.func @transform_7(%arg0: i32) -> (i32, i32, i32) {
    %c0_i32 = arith.constant 0 : i32
    %c0_i32_0 = arith.constant 0 : i32
    %c0_i32_1 = arith.constant 0 : i32
    %c0_i32_2 = arith.constant 0 : i32
    return %c0_i32, %c0_i32_0, %c0_i32_1 : i32, i32, i32
  }
  func.func @transform_8(%arg0: i32) -> (i32, i32) {
    %c0_i32 = arith.constant 0 : i32
    %c0_i32_0 = arith.constant 0 : i32
    %c0_i32_1 = arith.constant 0 : i32
    return %c0_i32, %c0_i32_0 : i32, i32
  }
  func.func @transform_9(%arg0: i32) -> (i32, i32, i32) {
    %c0_i32 = arith.constant 0 : i32
    %c0_i32_0 = arith.constant 0 : i32
    %c0_i32_1 = arith.constant 0 : i32
    return %arg0, %c0_i32, %c0_i32_0 : i32, i32, i32
  }
}

</mosaic_0001>

<bundles_post_ra>
// kernel: tpu_custom_call.1
= control target key start
LH: loop header
LB: loop body
LE: loop exit
PB: predicated region body
PF: predicated region fallthrough
CT: control target
= control target key end

     0   :  { %14 = vsyncpa [#allocation3], 0  ;;  %s2675_s0 = inlined_call_operand.vmem [shape: f32[2,8,32], index: 0, kind: input, shape index: {}]   ;;  %s2676_s1 = inlined_call_operand.vmem [shape: bf16[4,32,8], index: 1, kind: input, shape index: {}]   ;;  %s2677_s2 = inlined_call_operand.vmem [shape: f32[4,1,8], index: 2, kind: input, shape index: {}]   ;;  %s2678_s3 = inlined_call_operand.vmem [shape: bf16[4,32,8], index: 3, kind: input, shape index: {}]   ;;  %s2679_s4 = inlined_call_operand.vmem [shape: f32[4,1,8], index: 4, kind: input, shape index: {}]   ;;  %s2680_s5 = inlined_call_operand.vmem [shape: bf16[4,32,8], index: 5, kind: input, shape index: {}]   ;;  %s2681_s6 = inlined_call_operand.vmem [shape: f32[4,1,8], index: 6, kind: input, shape index: {}]   ;;  %s2682_s7 = inlined_call_operand.vmem [shape: bf16[4,8,32], index: 7, kind: input, shape index: {}]   ;;  %s2683_s8 = inlined_call_operand.vmem [shape: f32[1,32], index: 8, kind: input, shape index: {}]   ;;  %s2684_s9 = inlined_call_operand.hbm [shape: f32[2,8,32], index: 9, kind: output, shape index: {}]  }
   0x1   :  { %16 = vsyncpa [#allocation3 + $0x1], 0  ;;  %s2299_s30 = smov 0   ;;  %s2301_s10 = smov 0  }
   0x2   :  { %s2303_s11 = smov 0   ;;  %s2305_s12 = smov 0  }
   0x3 LB: > { %s2320_s13 = sadd.s32 4294967295, %s2244_s12   ;;  %s1802_s14 = sadd.s32 4294967294, %s2244_s12   ;;  %s2244_s12 = sphi %s2305_s12, %s2690_s12   ;;  %s2240_s11 = sphi %s2303_s11, %s2689_s11   ;;  %s2236_s10 = sphi %s2301_s10, %s2688_s10   ;;  %s2232_s30 = sphi %s2299_s30, %s2687_s30  }
   0x4   : > { %s2324_s15 = sadd.s32 1, %s2244_s12   ;;  %s223_s16 = sadd.s32 1, %s2240_s11 }
   0x5   : > { %s220_s17 = ssub.s32 %s2244_s12, %s2324_s15  ;;  %p233_p0 = scmp.ne.s32.totalorder %s2240_s11, %s2236_s10 }
   0x6   : > { %p221_p1 = scmp.eq.s32.totalorder %s220_s17, 0  ;;  %p234_p2 = scmp.eq.s32.totalorder %s2320_s13, 1 }
   0x7   : > { %p239_p3 = scmp.ne.s32.totalorder %s2236_s10, %s2232_s30  ;;  %p240_p4 = scmp.eq.s32.totalorder %s1802_s14, 1 }
   0x8   : > { %s2335_s18 = scalar_select %p221_p1, %s2240_s11, %s223_s16  }
   0x9   : > { %p2337_p5 = por %p234_p2, %p233_p0  ;;  %p2341_p6 = por %p240_p4, %p239_p3 }
   0xa   : > { %p1805_p7 = scmp.ge.s32.totalorder %s2244_s12, 1  ;;  %p289_p8 = scmp.lt.s32.totalorder %s2244_s12, 3 }
   0xc   : > { %p290_p9 = pnand %p1805_p7, %p289_p8 }
   0xd   : > { %v2142_v0 = vld [vmem:[%s2676_s1] sm:$0xff] (!%p290_p9)   ;;  %v2246_v1 = vmov (!%p290_p9), 0.0   ;;  %v2143_v2 = vld [vmem:[%s2676_s1 + $0x10] sm:$0xff] (!%p290_p9)   ;;  %v2144_v3 = vld [vmem:[%s2676_s1 + $0x8] sm:$0xff] (!%p290_p9)   ;;  %vm2247_vm0 = vmmov (!%p290_p9), 0   ;;  %p324_p10 = scmp.lt.s32.totalorder (!%p290_p9), %s2320_s13, 1 }
   0xe   : > { %293 = sbr.rel (%p290_p9) target bundleno = 1253 (0x4e5), region = 56  ;;  %1933 = vmatprep.subr.bf16.mxu0 (!%p290_p9), %v2246_v1  ;;  %1941 = vmatprep.subr.bf16.mxu1 (!%p290_p9), %v2246_v1  ;;  %v2145_v4 = vld [vmem:[%s2676_s1 + $0x18] sm:$0xff] (!%p290_p9)   ;;  %v2146_v5 = vld [vmem:[%s2676_s1 + $0x20] sm:$0xff] (!%p290_p9)   ;;  %v2147_v6 = vld [vmem:[%s2676_s1 + $0x30] sm:$0xff] (!%p290_p9)   ;;  %vm387_vm1 = vcmask (!%p290_p9), 261120   ;;  %vm1103_vm2 = vcmask (!%p290_p9), 64512  }
   0xf   : > { %1934 = vmatpush3.bf16.msra.mxu0 (!%p290_p9), %v2142_v0  ;;  %1937 = vmatprep.mubr.msk.bf16.mxu0 (!%p290_p9), %vm2247_vm0, %v2246_v1  ;;  %v2148_v9 = vld [vmem:[%s2676_s1 + $0x28] sm:$0xff] (!%p290_p9)   ;;  %v2149_v10 = vld [vmem:[%s2676_s1 + $0x38] sm:$0xff] (!%p290_p9)   ;;  %v2150_v11 = vld [vmem:[%s2678_s3] sm:$0xff] (!%p290_p9)   ;;  %vm1339_vm3 = vcmask (!%p290_p9), 1043456   ;;  %s321_s22 = sand.u32 (!%p290_p9), 1, %s2236_s10   ;;  %s1870_s26 = sshll.u32 (!%p290_p9), %s2320_s13, 7 }
  0x10   : > { %1942 = vmatpush3.bf16.msra.mxu1 (!%p290_p9), %v2143_v2  ;;  %1935 = vmatprep.subr.bf16.mxu0 (!%p290_p9), %v2246_v1  ;;  %v2151_v12 = vld [vmem:[%s2678_s3 + $0x10] sm:$0xff] (!%p290_p9)   ;;  %v2152_v13 = vld [vmem:[%s2678_s3 + $0x8] sm:$0xff] (!%p290_p9)   ;;  %v2153_v14 = vld [vmem:[%s2678_s3 + $0x18] sm:$0xff] (!%p290_p9)   ;;  %s2632_s16 = scalar_lea.hbm (!%p290_p9), %s2684_s9, %s1870_s26  ;;  %s1730_s17 = scalar_lea.sflag (!%p290_p9), [#allocation3], %s321_s22 }
  0x11   : > { %1943 = vmatprep.subr.bf16.mxu1 (!%p290_p9), %v2246_v1  ;;  %1945 = vmatprep.mubr.msk.bf16.mxu1 (!%p290_p9), %vm2247_vm0, %v2246_v1  ;;  %v2154_v15 = vld [vmem:[%s2678_s3 + $0x20] sm:$0xff] (!%p290_p9)   ;;  %v2155_v16 = vld [vmem:[%s2678_s3 + $0x30] sm:$0xff] (!%p290_p9)   ;;  %v2156_v17 = vld [vmem:[%s2678_s3 + $0x28] sm:$0xff] (!%p290_p9)   ;;  %s2248_s21 = smov (!%p290_p9), [#allocation2]  }
  0x12   : > { %v2157_v18 = vld [vmem:[%s2678_s3 + $0x38] sm:$0xff] (!%p290_p9)   ;;  %v2158_v19 = vld [vmem:[%s2680_s5] sm:$0xff] (!%p290_p9)   ;;  %v2159_v20 = vld [vmem:[%s2680_s5 + $0x10] sm:$0xff] (!%p290_p9)  }
  0x13   : > { %1936 = vmatpush3.bf16.msra.mxu0 (!%p290_p9), %v2144_v3  ;;  %v2160_v21 = vld [vmem:[%s2680_s5 + $0x8] sm:$0xff] (!%p290_p9)   ;;  %v2161_v22 = vld [vmem:[%s2680_s5 + $0x18] sm:$0xff] (!%p290_p9)   ;;  %v2162_v23 = vld [vmem:[%s2680_s5 + $0x20] sm:$0xff] (!%p290_p9)  }
  0x14   : > { %1944 = vmatpush3.bf16.msra.mxu1 (!%p290_p9), %v2145_v4  ;;  %1949 = vmatprep.subr.bf16.mxu0 (!%p290_p9), %v2246_v1  ;;  %v2163_v24 = vld [vmem:[%s2680_s5 + $0x30] sm:$0xff] (!%p290_p9)   ;;  %v2164_v25 = vld [vmem:[%s2680_s5 + $0x28] sm:$0xff] (!%p290_p9)   ;;  %v2165_v26 = vld [vmem:[%s2680_s5 + $0x38] sm:$0xff] (!%p290_p9)  }
  0x15   : > { %s325_s29 = scalar_select %p324_p10, %s2320_s13, 1  ;;  %1957 = vmatprep.subr.bf16.mxu1 %v2246_v1  ;;  %v1824_v43 = vld [vmem:[%s2679_s4] ss:$0 sm:$0xff]  ;;  %v1825_v44 = vld [vmem:[%s2679_s4 + $0x1] ss:$0 sm:$0xff] }
  0x16   : > { %v1808_v57 = vld [vmem:[%s2677_s2] ss:$0 sm:$0xff]  ;;  %v1809_v58 = vld [vmem:[%s2677_s2 + $0x1] ss:$0 sm:$0xff]  ;;  %v1826_v61 = vld [vmem:[%s2679_s4 + $0x2] ss:$0 sm:$0xff] }
  0x17   : > { %s1807_s14 = sshll.u32 %s325_s29, 3  ;;  %v1827_v62 = vld [vmem:[%s2679_s4 + $0x3] ss:$0 sm:$0xff] }
  0x18   : > { %s327_s23 = scalar_lea.vmem %s2675_s0, %s1807_s14 }
  0x19   : > { %v329_v7 = vld [vmem:[%s327_s23] sm:$0xff]  ;;  %s1806_s23 = sshll.u32 %s321_s22, 3 }
  0x1a   : > { %v2380_v8 = vpack.c.bf16 %v329_v7, %v329_v7  ;;  %s323_s27 = scalar_lea.vmem [#allocation2], %s1806_s23  ;;  %s2186_s23 = sshll.u32 %s2248_s21, 4  ;;  %s2187_s23 = int_to_ptr.vmem [resolvable:$false] %s2186_s23 }
  0x1b   : > { %s1743_s28 = sshll.u32 %s323_s27, 4  ;;  %s2188_s24 = scalar_lea.vmem %s2187_s23, 256  ;;  %s2634_s28 = int_to_ptr.vmem [resolvable:$true] %s1743_s28 }
  0x1c   : > { %1938 = vmatmul.mubr.msk.bf16.vlgmr.msra.gmra.mrb[0].mxu0 %vm387_vm1, %v2380_v8  ;;  %1946 = vmatmul.mubr.msk.bf16.vlgmr.msra.gmra.mrb[0].mxu1 %vm387_vm1, %v2380_v8  ;;  %s2182_s13 = scalar_lea.vmem %s2634_s28, 128  ;;  %p2189_p0 = scmp.lt.s32.totalorder %s2634_s28, %s2187_s23 }
  0x1d   : > { %1950 = vmatpush3.bf16.msra.mxu0 %v2146_v5  ;;  %1958 = vmatpush3.bf16.msra.mxu1 %v2147_v6  ;;  %p2183_p11 = scmp.ne.s32.totalorder %s2634_s28, %s2182_s13  ;;  %p2190_p1 = scmp.lt.s32.totalorder %s2188_s24, %s2182_s13 }
  0x1e   : > { %1951 = vmatprep.subr.bf16.mxu0 %v2246_v1  ;;  %1959 = vmatprep.subr.bf16.mxu1 %v2246_v1 }
  0x1f   : > { %1953 = vmatprep.mubr.msk.bf16.mxu0 %vm2247_vm0, %v2246_v1  ;;  %1961 = vmatprep.mubr.msk.bf16.mxu1 %vm2247_vm0, %v2246_v1  ;;  %p2184_p12 = pnand %p2183_p11, %p2337_p5  ;;  %p2191_p2 = por %p2190_p1, %p2189_p0 }
  0x21   : > { %1952 = vmatpush3.bf16.msra.mxu0 %v2148_v9  ;;  %1960 = vmatpush3.bf16.msra.mxu1 %v2149_v10  ;;  %p2185_p13 = pneg %p2184_p12 }
  0x22   : > { %1965 = vmatprep.subr.bf16.mxu0 %v2246_v1  ;;  %1973 = vmatprep.subr.bf16.mxu1 %v2246_v1 }
  0x23   : > { %p2192_p3 = pnand %p2191_p2, %p2185_p13 }
  0x24   : > { %1954 = vmatmul.mubr.msk.bf16.vlgmr.msra.gmra.mrb[4].mxu0 %vm387_vm1, %v2380_v8  ;;  %1962 = vmatmul.mubr.msk.bf16.vlgmr.msra.gmra.mrb[4].mxu1 %vm387_vm1, %v2380_v8 }
  0x25   : > { %1966 = vmatpush3.bf16.msra.mxu0 %v2150_v11  ;;  %1974 = vmatpush3.bf16.msra.mxu1 %v2151_v12 }
  0x26   : > { %1967 = vmatprep.subr.bf16.mxu0 %v2246_v1  ;;  %1975 = vmatprep.subr.bf16.mxu1 %v2246_v1 }
  0x27   : > { %1969 = vmatprep.mubr.msk.bf16.mxu0 %vm2247_vm0, %v2246_v1  ;;  %1977 = vmatprep.mubr.msk.bf16.mxu1 %vm2247_vm0, %v2246_v1 }
  0x29   : > { %1968 = vmatpush3.bf16.msra.mxu0 %v2152_v13  ;;  %1976 = vmatpush3.bf16.msra.mxu1 %v2153_v14 }
  0x2a   : > { %1981 = vmatprep.subr.bf16.mxu0 %v2246_v1  ;;  %1989 = vmatprep.subr.bf16.mxu1 %v2246_v1 }
  0x2c   : > { %1970 = vmatmul.mubr.msk.bf16.vlgmr.msra.gmra.mrb[8].mxu0 %vm387_vm1, %v2380_v8  ;;  %1978 = vmatmul.mubr.msk.bf16.vlgmr.msra.gmra.mrb[8].mxu1 %vm387_vm1, %v2380_v8 }
  0x2d   : > { %1982 = vmatpush3.bf16.msra.mxu0 %v2154_v15  ;;  %1990 = vmatpush3.bf16.msra.mxu1 %v2155_v16  ;;  %v1810_v16 = vld [vmem:[%s2677_s2 + $0x2] ss:$0 sm:$0xff] }
  0x2e   : > { %1983 = vmatprep.subr.bf16.mxu0 %v2246_v1  ;;  %1991 = vmatprep.subr.bf16.mxu1 %v2246_v1 }
  0x2f   : > { %1985 = vmatprep.mubr.msk.bf16.mxu0 %vm2247_vm0, %v2246_v1  ;;  %1993 = vmatprep.mubr.msk.bf16.mxu1 %vm2247_vm0, %v2246_v1 }
  0x31   : > { %1984 = vmatpush3.bf16.msra.mxu0 %v2156_v17  ;;  %1992 = vmatpush3.bf16.msra.mxu1 %v2157_v18  ;;  %v1811_v17 = vld [vmem:[%s2677_s2 + $0x3] ss:$0 sm:$0xff] }
  0x32   : > { %1997 = vmatprep.subr.bf16.mxu0 %v2246_v1  ;;  %2005 = vmatprep.subr.bf16.mxu1 %v2246_v1 }
  0x34   : > { %1986 = vmatmul.mubr.msk.bf16.vlgmr.msra.gmra.mrb[12].mxu0 %vm387_vm1, %v2380_v8  ;;  %1994 = vmatmul.mubr.msk.bf16.vlgmr.msra.gmra.mrb[12].mxu1 %vm387_vm1, %v2380_v8 }
  0x35   : > { %1998 = vmatpush3.bf16.msra.mxu0 %v2158_v19  ;;  %2001 = vmatprep.mubr.msk.bf16.mxu0 %vm2247_vm0, %v2246_v1 }
  0x36   : > { %1999 = vmatprep.subr.bf16.mxu0 %v2246_v1  ;;  %2009 = vmatprep.mubr.msk.bf16.mxu1 %vm2247_vm0, %v2246_v1 }
  0x37   : > { %2006 = vmatpush3.bf16.msra.mxu1 %v2159_v20 }
  0x38   : > { %2007 = vmatprep.subr.bf16.mxu1 %v2246_v1 }
  0x39   : > { %2000 = vmatpush3.bf16.msra.mxu0 %v2160_v21 }
  0x3a   : > { %2013 = vmatprep.subr.bf16.mxu0 %v2246_v1 }
  0x3b   : > { %2008 = vmatpush3.bf16.msra.mxu1 %v2161_v22 }
  0x3c   : > { %2002 = vmatmul.mubr.msk.bf16.vlgmr.msra.gmra.mrb[16].mxu0 %vm387_vm1, %v2380_v8  ;;  %2021 = vmatprep.subr.bf16.mxu1 %v2246_v1 }
  0x3d   : > { %2017 = vmatprep.mubr.msk.bf16.mxu0 %vm2247_vm0, %v2246_v1  ;;  %2014 = vmatpush3.bf16.msra.mxu0 %v2162_v23 }
  0x3e   : > { %2010 = vmatmul.mubr.msk.bf16.vlgmr.msra.gmra.mrb[16].mxu1 %vm387_vm1, %v2380_v8  ;;  %2015 = vmatprep.subr.bf16.mxu0 %v2246_v1 }
  0x3f   : > { %2022 = vmatpush3.bf16.msra.mxu1 %v2163_v24  ;;  %2025 = vmatprep.mubr.msk.bf16.mxu1 %vm2247_vm0, %v2246_v1  ;;  %v1840_v24 = vld [vmem:[%s2681_s6] ss:$0 sm:$0xff] }
  0x40   : > { %2023 = vmatprep.subr.bf16.mxu1 %v2246_v1 }
  0x41   : > { %2016 = vmatpush3.bf16.msra.mxu0 %v2164_v25 }
  0x42   : > { %2029 = vmatprep.subr.bf16.mxu0 %v2246_v1 }
  0x43   : > { %2024 = vmatpush3.bf16.msra.mxu1 %v2165_v26  ;;  %v1841_v26 = vld [vmem:[%s2681_s6 + $0x1] ss:$0 sm:$0xff] }
  0x44   : > { %2035 = vmatprep.subr.bf16.mxu1 %v2246_v1  ;;  %2018 = vmatmul.mubr.msk.bf16.vlgmr.msra.gmra.mrb[20].mxu0 %vm387_vm1, %v2380_v8 }
  0x45   : > { %2031 = vmatprep.mubr.msk.bf16.mxu0 %vm2247_vm0, %v2246_v1 }
  0x46   : > { %2026 = vmatmul.mubr.msk.bf16.vlgmr.msra.gmra.mrb[20].mxu1 %vm387_vm1, %v2380_v8 }
  0x47   : > { %2037 = vmatprep.mubr.msk.bf16.mxu1 %vm2247_vm0, %v2246_v1 }
  0xef   : > { %v425_v27 = vpop.f32.mrb[0].mxu0  ;;  %v477_v28 = vpop.f32.mrb[0].mxu1 }
  0xf0   : > { %v1939_v29 = vpop.f32.mrb[1].mxu0  ;;  %v1947_v30 = vpop.f32.mrb[1].mxu1  ;;  %v426_v63 = vadd.f32 %v1808_v57, %v425_v27  ;;  %v478_v0 = vadd.f32 %v1809_v58, %v477_v28 }
  0xf1   : > { %v428_v31 = vpop.f32.mrb[2].mxu0  ;;  %v480_v32 = vpop.f32.mrb[2].mxu1 }
  0xf2   : > { %v1940_v33 = vpop.f32.mrb[3].mxu0  ;;  %v1948_v34 = vpop.f32.mrb[3].mxu1  ;;  %v1091_v10 = vpack.c.bf16 %v426_v63, %v426_v63  ;;  %v1092_v11 = vpack.c.bf16 %v478_v0, %v478_v0 }
  0xf7   : > { %v529_v35 = vpop.f32.mrb[4].mxu0  ;;  %v581_v36 = vpop.f32.mrb[4].mxu1 }
  0xf8   : > { %v1955_v37 = vpop.f32.mrb[5].mxu0  ;;  %v1963_v38 = vpop.f32.mrb[5].mxu1  ;;  %v530_v20 = vadd.f32 %v1810_v16, %v529_v35  ;;  %v582_v21 = vadd.f32 %v1811_v17, %v581_v36 }
  0xf9   : > { %v532_v39 = vpop.f32.mrb[6].mxu0  ;;  %v584_v40 = vpop.f32.mrb[6].mxu1 }
  0xfa   : > { %v1956_v41 = vpop.f32.mrb[7].mxu0  ;;  %v1964_v42 = vpop.f32.mrb[7].mxu1  ;;  %v1093_v22 = vpack.c.bf16 %v530_v20, %v530_v20  ;;  %v1094_v23 = vpack.c.bf16 %v582_v21, %v582_v21 }
  0xff   : > { %v677_v45 = vpop.f32.mrb[8].mxu0  ;;  %v729_v46 = vpop.f32.mrb[8].mxu1 }
 0x100   : > { %v678_v47 = vadd.f32 %v1824_v43, %v677_v45  ;;  %v730_v48 = vadd.f32 %v1825_v44, %v729_v46  ;;  %v1971_v49 = vpop.f32.mrb[9].mxu0  ;;  %v1979_v50 = vpop.f32.mrb[9].mxu1 }
 0x101   : > { %v680_v51 = vpop.f32.mrb[10].mxu0  ;;  %v732_v52 = vpop.f32.mrb[10].mxu1 }
 0x102   : > { %v1095_v53 = vpack.c.bf16 %v678_v47, %v678_v47  ;;  %v1096_v54 = vpack.c.bf16 %v730_v48, %v730_v48  ;;  %v1972_v55 = vpop.f32.mrb[11].mxu0  ;;  %v1980_v56 = vpop.f32.mrb[11].mxu1 }
 0x104   : > { %v1108_v59 = vsel %vm1103_vm2, %v1095_v53, 0  ;;  %v1154_v60 = vsel %vm1103_vm2, %v1096_v54, 0 }
 0x105   : > { %2030 = vmatpush3.bf16.xpose.msra.mxu0 %v1108_v59  ;;  %2036 = vmatpush3.bf16.xpose.msra.mxu1 %v1154_v60 }
 0x106   : > { %2041 = vmatprep.subr.bf16.mxu0 %v2246_v1  ;;  %2047 = vmatprep.subr.bf16.mxu1 %v2246_v1 }
 0x107   : > { %v781_v2 = vpop.f32.mrb[12].mxu0  ;;  %v833_v3 = vpop.f32.mrb[12].mxu1 }
 0x108   : > { %v782_v4 = vadd.f32 %v1826_v61, %v781_v2  ;;  %v834_v5 = vadd.f32 %v1827_v62, %v833_v3  ;;  %v1987_v6 = vpop.f32.mrb[13].mxu0  ;;  %v1995_v7 = vpop.f32.mrb[13].mxu1 }
 0x109   : > { %v784_v8 = vpop.f32.mrb[14].mxu0  ;;  %v836_v9 = vpop.f32.mrb[14].mxu1 }
 0x10a   : > { %v1097_v12 = vpack.c.bf16 %v782_v4, %v782_v4  ;;  %v1098_v13 = vpack.c.bf16 %v834_v5, %v834_v5  ;;  %v1988_v14 = vpop.f32.mrb[15].mxu0  ;;  %v1996_v15 = vpop.f32.mrb[15].mxu1 }
 0x10c   : > { %v1200_v18 = vsel %vm1103_vm2, %v1097_v12, 0  ;;  %v1246_v19 = vsel %vm1103_vm2, %v1098_v13, 0  ;;  %2032 = vmatmul.mubr.msk.bf16.vlgmr.msra.gmra.mrb[24].mxu0 %vm1103_vm2, %v1091_v10  ;;  %2038 = vmatmul.mubr.msk.bf16.vlgmr.msra.gmra.mrb[24].mxu1 %vm1103_vm2, %v1092_v11 }
 0x10d   : > { %2042 = vmatpush3.bf16.xpose.msra.mxu0 %v1200_v18  ;;  %2048 = vmatpush3.bf16.xpose.msra.mxu1 %v1246_v19 }
 0x10e   : > { %2043 = vmatprep.mubr.msk.bf16.mxu0 %vm2247_vm0, %v2246_v1  ;;  %2049 = vmatprep.mubr.msk.bf16.mxu1 %vm2247_vm0, %v2246_v1 }
 0x10f   : > { %2053 = vmatprep.subr.bf16.mxu0 %v2246_v1  ;;  %2059 = vmatprep.subr.bf16.mxu1 %v2246_v1  ;;  %v929_v25 = vpop.f32.mrb[16].mxu0 }
 0x110   : > { %v930_v27 = vadd.f32 %v1840_v24, %v929_v25  ;;  %v2003_v28 = vpop.f32.mrb[17].mxu0 }
 0x111   : > { %v932_v29 = vpop.f32.mrb[18].mxu0  ;;  %v981_v30 = vpop.f32.mrb[16].mxu1 }
 0x112   : > { %v1099_v31 = vpack.c.bf16 %v930_v27, %v930_v27  ;;  %v2004_v32 = vpop.f32.mrb[19].mxu0  ;;  %v982_v33 = vadd.f32 %v1841_v26, %v981_v30  ;;  %v2011_v34 = vpop.f32.mrb[17].mxu1  ;;  %v1842_v27 = vld [vmem:[%s2681_s6 + $0x2] ss:$0 sm:$0xff]  ;;  %v1843_v30 = vld [vmem:[%s2681_s6 + $0x3] ss:$0 sm:$0xff] }
 0x113   : > { %v984_v35 = vpop.f32.mrb[18].mxu1 }
 0x114   : > { %2044 = vmatmul.mubr.msk.bf16.vlgmr.msra.gmra.mrb[28].mxu0 %vm1103_vm2, %v1093_v22  ;;  %2050 = vmatmul.mubr.msk.bf16.vlgmr.msra.gmra.mrb[28].mxu1 %vm1103_vm2, %v1094_v23  ;;  %v1341_v36 = vsel %vm1339_vm3, %v1099_v31, 0  ;;  %v1100_v37 = vpack.c.bf16 %v982_v33, %v982_v33  ;;  %v2012_v38 = vpop.f32.mrb[19].mxu1 }
 0x115   : > { %2055 = vmatprep.mubr.msk.bf16.mxu0 %vm2247_vm0, %v2246_v1  ;;  %2061 = vmatprep.mubr.msk.bf16.mxu1 %vm2247_vm0, %v2246_v1 }
 0x116   : > { %2054 = vmatpush3.bf16.msra.mxu0 %v1341_v36  ;;  %v1387_v39 = vsel %vm1339_vm3, %v1100_v37, 0 }
 0x117   : > { %2065 = vmatprep.subr.bf16.mxu0 %v2246_v1  ;;  %2060 = vmatpush3.bf16.msra.mxu1 %v1387_v39  ;;  %v2558_v40 = vpop.f32.mrb[20].mxu0 }
 0x118   : > { %2071 = vmatprep.subr.bf16.mxu1 %v2246_v1  ;;  %v2019_v42 = vpop.f32.mrb[21].mxu0  ;;  %v1034_v28 = vadd.f32 %v1842_v27, %v2558_v40 }
 0x119   : > { %v2560_v41 = vpop.f32.mrb[20].mxu1  ;;  %v1036_v44 = vpop.f32.mrb[22].mxu0 }
 0x11a   : > { %v2027_v43 = vpop.f32.mrb[21].mxu1  ;;  %v2020_v46 = vpop.f32.mrb[23].mxu0  ;;  %v1101_v32 = vpack.c.bf16 %v1034_v28, %v1034_v28  ;;  %v1086_v33 = vadd.f32 %v1843_v30, %v2560_v41  ;;  %v1525_v41 = vld [vmem:[%s2682_s7] sm:$0xf] }
 0x11b   : > { %v1088_v45 = vpop.f32.mrb[22].mxu1 }
 0x11c   : > { %v2028_v47 = vpop.f32.mrb[23].mxu1  ;;  %v1433_v38 = vsel %vm1339_vm3, %v1101_v32, 0  ;;  %v1102_v39 = vpack.c.bf16 %v1086_v33, %v1086_v33  ;;  %v1868_v32 = vld [vmem:[%s2683_s8] ss:$0 sm:$0xff] }
 0x11d   : > { %v1533_v47 = vsel %vm1339_vm3, %v1525_v41, 0 }
 0x11e   : > { %v1479_v44 = vsel %vm1339_vm3, %v1102_v39, 0 }
 0x1df   : > { %v1144_v48 = vpop.f32.mrb[24].mxu0  ;;  %v1190_v49 = vpop.f32.mrb[24].mxu1 }
 0x1e0   : > { %v2033_v50 = vpop.f32.mrb[25].mxu0  ;;  %v2039_v51 = vpop.f32.mrb[25].mxu1  ;;  %v1288_v52 = vsel %vm1103_vm2, %v1144_v48, -inf  ;;  %v1291_v57 = vsel %vm1103_vm2, %v1190_v49, -inf }
 0x1e1   : > { %v1193_v53 = vpop.f32.mrb[26].mxu1  ;;  %1289 = vmax.xlane.f32.xlu0 %v1288_v52  ;;  %v1147_v54 = vpop.f32.mrb[26].mxu0  ;;  %v1526_v51 = vld [vmem:[%s2682_s7 + $0x4] sm:$0xf] }
 0x1e2   : > { %v2034_v55 = vpop.f32.mrb[27].mxu0  ;;  %v2040_v56 = vpop.f32.mrb[27].mxu1  ;;  %v1579_v52 = vsel %vm1339_vm3, %v1526_v51, 0  ;;  %v1527_v53 = vld [vmem:[%s2682_s7 + $0x8] sm:$0xf] }
 0x1e5   : > { %1292 = vmax.xlane.f32.xlu0 %v1291_v57  ;;  %v1625_v57 = vsel %vm1339_vm3, %v1527_v53, 0 }
 0x1e7   : > { %v1236_v58 = vpop.f32.mrb[28].mxu0  ;;  %v1282_v59 = vpop.f32.mrb[28].mxu1 }
 0x1e8   : > { %v2045_v60 = vpop.f32.mrb[29].mxu0  ;;  %v2051_v61 = vpop.f32.mrb[29].mxu1  ;;  %v1294_v62 = vsel %vm1103_vm2, %v1236_v58, -inf  ;;  %v1297_v4 = vsel %vm1103_vm2, %v1282_v59, -inf }
 0x1e9   : > { %v1285_v63 = vpop.f32.mrb[30].mxu1  ;;  %1295 = vmax.xlane.f32.xlu1 %v1294_v62  ;;  %v1239_v0 = vpop.f32.mrb[30].mxu0 }
 0x1ea   : > { %v2046_v2 = vpop.f32.mrb[31].mxu0  ;;  %v2052_v3 = vpop.f32.mrb[31].mxu1 }
 0x1ed   : > { %1298 = vmax.xlane.f32.xlu1 %v1297_v4 }
 0x26e   : > { %v1290_v5 = vpop.xlane.xlu0 %1289 }
 0x26f   : > { %v1300_v6 = vsub.f32 %v1144_v48, %v1290_v5 }
 0x271   : > { %v1304_v7 = vmul.f32 1.442695, %v1300_v6 }
 0x272   : > { %v1293_v8 = vpop.xlane.xlu0 %1292 }
 0x273   : > { %2166 = vpow2.f32 %v1304_v7  ;;  %v1301_v9 = vsub.f32 %v1190_v49, %v1293_v8 }
 0x275   : > { %v1306_v10 = vmul.f32 1.442695, %v1301_v9 }
 0x276   : > { %v1296_v11 = vpop.xlane.xlu1 %1295 }
 0x277   : > { %2168 = vpow2.f32 %v1306_v10  ;;  %v1302_v12 = vsub.f32 %v1236_v58, %v1296_v11 }
 0x279   : > { %v1308_v13 = vmul.f32 1.442695, %v1302_v12 }
 0x27a   : > { %v1299_v14 = vpop.xlane.xlu1 %1298 }
 0x27b   : > { %2170 = vpow2.f32 %v1308_v13  ;;  %v1303_v15 = vsub.f32 %v1282_v59, %v1299_v14  ;;  %v1528_v59 = vld [vmem:[%s2682_s7 + $0xc] sm:$0xf] }
 0x27c   : > { %v1671_v0 = vsel %vm1339_vm3, %v1528_v59, 0 }
 0x27d   : > { %v2167_v16 = vpop.eup %2166  ;;  %v1310_v17 = vmul.f32 1.442695, %v1303_v15 }
 0x27e   : > { %v1312_v18 = vsel %vm1103_vm2, %v2167_v16, 0.0 }
 0x27f   : > { %2172 = vpow2.f32 %v1310_v17  ;;  %1313 = vadd.xlane.f32.xlu0 %v1312_v18 }
 0x281   : > { %v2169_v19 = vpop.eup %2168 }
 0x282   : > { %v1315_v20 = vsel %vm1103_vm2, %v2169_v19, 0.0 }
 0x283   : > { %1316 = vadd.xlane.f32.xlu1 %v1315_v20 }
 0x285   : > { %v2171_v21 = vpop.eup %2170 }
 0x286   : > { %v1318_v22 = vsel %vm1103_vm2, %v2171_v21, 0.0 }
 0x287   : > { %1319 = vadd.xlane.f32.xlu0 %v1318_v22 }
 0x289   : > { %v2173_v23 = vpop.eup %2172 }
 0x28a   : > { %v1321_v24 = vsel %vm1103_vm2, %v2173_v23, 0.0 }
 0x28b   : > { %1322 = vadd.xlane.f32.xlu1 %v1321_v24 }
 0x30c   : > { %v1314_v25 = vpop.xlane.xlu0 %1313 }
 0x30d   : > { %2174 = vrcp.f32 %v1314_v25 }
 0x310   : > { %v1317_v26 = vpop.xlane.xlu1 %1316 }
 0x311   : > { %2176 = vrcp.f32 %v1317_v26 }
 0x314   : > { %v1320_v29 = vpop.xlane.xlu0 %1319 }
 0x315   : > { %2178 = vrcp.f32 %v1320_v29 }
 0x317   : > { %v2175_v31 = vpop.eup %2174 }
 0x318   : > { %v1328_v34 = vmul.f32 %v2175_v31, %v2167_v16  ;;  %v1323_v35 = vpop.xlane.xlu1 %1322 }
 0x319   : > { %2180 = vrcp.f32 %v1323_v35 }
 0x31a   : > { %v1332_v36 = vpack.c.bf16 %v1328_v34, %v1328_v34 }
 0x31b   : > { %v2177_v37 = vpop.eup %2176 }
 0x31c   : > { %v1329_v42 = vmul.f32 %v2177_v37, %v2169_v19  ;;  %2056 = vmatmul.mubr.msk.bf16.vlgmr.msra.gmra.mrb[32].mxu0 %vm1103_vm2, %v1332_v36 }
 0x31d   : > { %2066 = vmatpush3.bf16.msra.mxu0 %v1433_v38  ;;  %2067 = vmatprep.mubr.msk.bf16.mxu0 %vm2247_vm0, %v2246_v1 }
 0x31e   : > { %v1333_v40 = vpack.c.bf16 %v1329_v42, %v1329_v42  ;;  %2077 = vmatprep.subr.bf16.mxu0 %v2246_v1 }
 0x31f   : > { %v2179_v43 = vpop.eup %2178 }
 0x320   : > { %v1330_v45 = vmul.f32 %v2179_v43, %v2171_v21  ;;  %2062 = vmatmul.mubr.msk.bf16.vlgmr.msra.gmra.mrb[32].mxu1 %vm1103_vm2, %v1333_v40 }
 0x321   : > { %2072 = vmatpush3.bf16.msra.mxu1 %v1479_v44  ;;  %2073 = vmatprep.mubr.msk.bf16.mxu1 %vm2247_vm0, %v2246_v1 }
 0x322   : > { %v1334_v46 = vpack.c.bf16 %v1330_v45, %v1330_v45  ;;  %2083 = vmatprep.subr.bf16.mxu1 %v2246_v1 }
 0x323   : > { %v2181_v48 = vpop.eup %2180 }
 0x324   : > { %v1331_v49 = vmul.f32 %v2181_v48, %v2173_v23  ;;  %2068 = vmatmul.mubr.msk.bf16.vlgmr.msra.gmra.mrb[36].mxu0 %vm1103_vm2, %v1334_v46 }
 0x325   : > { %2078 = vmatpush3.bf16.msra.mxu0 %v1533_v47  ;;  %2079 = vmatprep.mubr.msk.bf16.mxu0 %vm2247_vm0, %v2246_v1 }
 0x326   : > { %v1335_v50 = vpack.c.bf16 %v1331_v49, %v1331_v49  ;;  %2089 = vmatprep.subr.bf16.mxu0 %v2246_v1 }
 0x328   : > { %2074 = vmatmul.mubr.msk.bf16.vlgmr.msra.gmra.mrb[36].mxu1 %vm1103_vm2, %v1335_v50 }
 0x329   : > { %2085 = vmatprep.mubr.msk.bf16.mxu1 %vm2247_vm0, %v2246_v1  ;;  %2084 = vmatpush3.bf16.msra.mxu1 %v1579_v52 }
 0x32a   : > { %2095 = vmatprep.subr.bf16.mxu1 %v2246_v1 }
 0x3ef   : > { %v1377_v54 = vpop.f32.mrb[32].mxu0 }
 0x3f0   : > { %v1521_v55 = vpack.c.bf16 %v1377_v54, %v1377_v54  ;;  %v2057_v56 = vpop.f32.mrb[33].mxu0 }
 0x3f1   : > { %v1380_v58 = vpop.f32.mrb[34].mxu0 }
 0x3f2   : > { %v2058_v60 = vpop.f32.mrb[35].mxu0  ;;  %2080 = vmatmul.mubr.msk.bf16.vlgmr.msra.gmra.mrb[40].mxu0 %vm1103_vm2, %v1521_v55 }
 0x3f3   : > { %v1423_v61 = vpop.f32.mrb[32].mxu1  ;;  %2090 = vmatpush3.bf16.msra.mxu0 %v1625_v57  ;;  %2091 = vmatprep.mubr.msk.bf16.mxu0 %vm2247_vm0, %v2246_v1 }
 0x3f4   : > { %v1522_v62 = vpack.c.bf16 %v1423_v61, %v1423_v61  ;;  %v2063_v63 = vpop.f32.mrb[33].mxu1 }
 0x3f5   : > { %v1426_v2 = vpop.f32.mrb[34].mxu1 }
 0x3f6   : > { %v2064_v3 = vpop.f32.mrb[35].mxu1  ;;  %2086 = vmatmul.mubr.msk.bf16.vlgmr.msra.gmra.mrb[40].mxu1 %vm1103_vm2, %v1522_v62 }
 0x3f7   : > { %v1469_v4 = vpop.f32.mrb[36].mxu0  ;;  %2096 = vmatpush3.bf16.msra.mxu1 %v1671_v0  ;;  %2097 = vmatprep.mubr.msk.bf16.mxu1 %vm2247_vm0, %v2246_v1 }
 0x3f8   : > { %v1523_v5 = vpack.c.bf16 %v1469_v4, %v1469_v4  ;;  %v2069_v6 = vpop.f32.mrb[37].mxu0 }
 0x3f9   : > { %v1472_v7 = vpop.f32.mrb[38].mxu0 }
 0x3fa   : > { %v2070_v8 = vpop.f32.mrb[39].mxu0  ;;  %2092 = vmatmul.mubr.msk.bf16.vlgmr.msra.gmra.mrb[44].mxu0 %vm1103_vm2, %v1523_v5 }
 0x3fb   : > { %v1515_v9 = vpop.f32.mrb[36].mxu1 }
 0x3fc   : > { %v1524_v10 = vpack.c.bf16 %v1515_v9, %v1515_v9  ;;  %v2075_v11 = vpop.f32.mrb[37].mxu1 }
 0x3fd   : > { %v1518_v12 = vpop.f32.mrb[38].mxu1 }
 0x3fe   : > { %v2076_v13 = vpop.f32.mrb[39].mxu1  ;;  %2098 = vmatmul.mubr.msk.bf16.vlgmr.msra.gmra.mrb[44].mxu1 %vm1103_vm2, %v1524_v10 }
 0x4c5   : > { %v1569_v14 = vpop.f32.mrb[40].mxu0 }
 0x4c6   : > { %v2081_v15 = vpop.f32.mrb[41].mxu0  ;;  %v1713_v1 = vsel %vm387_vm1, %v1569_v14, 0.0 }
 0x4c7   : > { %v1572_v16 = vpop.f32.mrb[42].mxu0 }
 0x4c8   : > { %v2082_v17 = vpop.f32.mrb[43].mxu0 }
 0x4c9   : > { %v1615_v18 = vpop.f32.mrb[40].mxu1 }
 0x4ca   : > { %v1714_v19 = vsel %vm387_vm1, %v1615_v18, 0.0  ;;  %v2087_v20 = vpop.f32.mrb[41].mxu1 }
 0x4cb   : > { %v1715_v21 = vadd.f32 %v1714_v19, %v1713_v1  ;;  %v1618_v22 = vpop.f32.mrb[42].mxu1 }
 0x4cc   : > { %v2088_v23 = vpop.f32.mrb[43].mxu1 }
 0x4cd   : > { %v1661_v24 = vpop.f32.mrb[44].mxu0 }
 0x4ce   : > { %v1716_v25 = vsel %vm387_vm1, %v1661_v24, 0.0  ;;  %v2093_v26 = vpop.f32.mrb[45].mxu0 }
 0x4cf   : > { %v1717_v27 = vadd.f32 %v1716_v25, %v1715_v21  ;;  %v1664_v28 = vpop.f32.mrb[46].mxu0 }
 0x4d0   : > { %v2094_v29 = vpop.f32.mrb[47].mxu0 }
 0x4d1   : > { %v1707_v30 = vpop.f32.mrb[44].mxu1 }
 0x4d2   : > { %v1718_v31 = vsel %vm387_vm1, %v1707_v30, 0.0  ;;  %v2099_v33 = vpop.f32.mrb[45].mxu1 }
 0x4d3   : > { %v1719_v34 = vadd.f32 %v1718_v31, %v1717_v27  ;;  %v1710_v35 = vpop.f32.mrb[46].mxu1 }
 0x4d4   : > { %v2100_v36 = vpop.f32.mrb[47].mxu1 }
 0x4d5   : > { %v1727_v37 = vadd.f32 %v1868_v32, %v1719_v34 }
 0x4d7   : > { %1728 = vst.msk [vmem:[%s323_s27] sm:$0xff] %vm387_vm1, %v1727_v37 }
 0x4d8   : > { %2195 = shalt.err (!%p2192_p3)
}
 0x4d9   : > { %s2196_s22 = scalar_lea.hbm %s2632_s16, 128  ;;  %s2200_s27 = scalar_lea.hbm %s2684_s9, 256 }
 0x4da   : > { %p2197_p4 = scmp.ne.s32.totalorder %s2632_s16, %s2196_s22  ;;  %p2201_p9 = scmp.lt.u32.totalorder %s2632_s16, %s2684_s9 }
 0x4db   : > { %p2202_p10 = scmp.lt.u32.totalorder %s2200_s27, %s2196_s22  ;;  %p2204_p12 = scmp.lt.u32.totalorder %s2196_s22, %s2632_s16 }
 0x4dc   : > { %p2198_p7 = pnand %p2197_p4, %p2337_p5 }
 0x4dd   : > { %p2203_p11 = por %p2202_p10, %p2201_p9 }
 0x4de   : > { %p2199_p8 = pneg %p2198_p7 }
 0x4df   : > { %p2205_p13 = por %p2204_p12, %p2203_p11 }
 0x4e1   : > { %p2206_p0 = pnand %p2205_p13, %p2199_p8 }
 0x4e3   : > { %2209 = shalt.err (!%p2206_p0)
}
 0x4e4   : > { %2101 = dma.vmem_to_hbm [thread:$0]  (%p2337_p5), %s2634_s28, 128, %s2632_s16, %s1730_s17  }
 0x4e5 PF: > { %p2107_p1 = scmp.ge.s32.totalorder %s2244_s12, 2  ;;  %s1755_s13 = sand.u32 1, %s2232_s30  }
 0x4e6   : > { %s1756_s21 = scalar_lea.sflag [#allocation3], %s1755_s13 }
 0x4e7   : > { %p2104_p2 = pnand %p2107_p1, %p2341_p6 }
 0x4e9   : > { %2227 = dma.done.wait (!%p2104_p2), %s1756_s21, 128  }
 0x4ea   : > { %2229 = vsyncadd (!%p2104_p2), %s1756_s21, 4294967168  ;;  %p19_p3 = scmp.ge.s32.totalorder %s2324_s15, 4   ;;  %s2687_s30 = smov %s2236_s10 }
 0x4eb   : > { %s2688_s10 = smov %s2240_s11  ;;  %s2689_s11 = smov %s2335_s18 }
 0x4ec   : > { %s2690_s12 = smov %s2324_s15  ;;  %21 = sbr.rel (!%p19_p3) target bundleno = 3 (0x3), region = 91 }
 0x4f3   :  { %1761 = vsyncpa [#allocation3], 1 }
 0x4f4   :  { %1763 = vsyncpa [#allocation3 + $0x1], 1 }

</bundles_post_ra>
